<compile_context>
chip_gen: v7x
topology: tpu7x:2x2x1
jax: 0.10.0
libtpu: 0.0.40
codegen_flags: <defaults>
</compile_context>

<pallas_src>
import jax
import jax.numpy as jnp
from jax.experimental import pallas as pl
from jax.experimental.pallas import tpu as pltpu

# vggish_params constants
EMBEDDING_SIZE = 128
QUANTIZE_MIN_VAL = -2.0
QUANTIZE_MAX_VAL = +2.0
_QUANT_SCALE = 255.0 / (QUANTIZE_MAX_VAL - QUANTIZE_MIN_VAL)   # 63.75
_QUANT_BIAS = -QUANTIZE_MIN_VAL * _QUANT_SCALE                 # 127.5

# Tiling knobs (see header comment).
_MAX_BLOCK_ROWS = 4096     # 4096*128*4 B = 2 MiB per f32 buffer
_MIN_BLOCK_ROWS = 512      # keep per-step DMA >> ~0.35 us fixed overhead
_TARGET_GRID_STEPS = 4     # v7x: 2 TCs * >= 2 iterations each


def _round_up(x, m):
    return ((x + m - 1) // m) * m


def _postprocess_kernel(x_ref, evt_ref, bias_ref, o_ref):
    # x_ref:    [TB, E]  embeddings tile (f32 or bf16)
    # evt_ref:  [E, E]   pca_eigen_vectors.T * 63.75 (contraction dim first)
    # bias_ref: [1, E]   (pca_eigen_vectors @ pca_means).T * 63.75 - 127.5
    # o_ref:    [TB, E]  quantized output, integer values in [0, 255]
    acc = jnp.dot(x_ref[...], evt_ref[...], preferred_element_type=jnp.float32)
    q = jnp.round(jnp.clip(acc - bias_ref[...], 0.0, 255.0))
    o_ref[...] = q.astype(o_ref.dtype)


def prepare_postprocess_params(pca_eigen_vectors, pca_means, *,
                               matmul_dtype=jnp.float32):
    """Hoist all per-call glue out of the hot path.

    Args:
      pca_eigen_vectors: [128, 128] float32 (torch param layout)
      pca_means:         [128, 1]   float32 (torch param layout)
      matmul_dtype:      dtype for the eigen-vector matrix on the MXU
                         (use jnp.bfloat16 together with bf16 embeddings).

    Returns:
      evt:  [128, 128]  eigen vectors transposed and pre-scaled by 63.75
      bias: [1, 128]    folded mean + quantization offset, float32
    """
    ev = jnp.asarray(pca_eigen_vectors, jnp.float32)
    mu = jnp.asarray(pca_means, jnp.float32)
    evt = (ev.T * _QUANT_SCALE).astype(matmul_dtype)
    bias = ((ev @ mu).reshape(1, EMBEDDING_SIZE) * _QUANT_SCALE
            - _QUANT_BIAS).astype(jnp.float32)
    return evt, bias


def postprocess_prepared(embeddings, evt, bias, *, out_dtype=jnp.float32,
                         block_rows=None):
    """Pallas postprocess using pre-transformed params (hot path).

    out_dtype=jnp.uint8 is the recommended batch path (4x cheaper writeback,
    values are exact integers in [0, 255]); float32 matches torch exactly in
    dtype.  bf16 `embeddings` are consumed directly (bf16 MXU, f32 accumulate).
    """
    assert embeddings.ndim == 2, f"Expected 2-d batch, got {embeddings.shape}"
    assert embeddings.shape[1] == EMBEDDING_SIZE, \
        f"Bad batch shape: {embeddings.shape}"
    B, E = embeddings.shape
    out_dtype = jnp.dtype(out_dtype)

    # bf16-input fast path: match evt to the bf16 MXU path (cast is outside the
    # kernel and touches only 64 KiB).  Never cast an f32 HBM input down.
    if embeddings.dtype == jnp.bfloat16 and evt.dtype != jnp.bfloat16:
        evt = evt.astype(jnp.bfloat16)
    bias = bias.astype(jnp.float32)

    # uint8 native packed tile is (32, 128); f32 is (8, 128).
    align = 32 if out_dtype == jnp.dtype(jnp.uint8) else 8

    if block_rows is None:
        # Big tiles to amortize per-step overhead, but keep >= ~4 grid steps
        # on large batches so v7x's two TensorCores both get work.
        tb = min(_MAX_BLOCK_ROWS,
                 max(_MIN_BLOCK_ROWS,
                     _round_up(pl.cdiv(B, _TARGET_GRID_STEPS), align)))
    else:
        tb = _round_up(block_rows, align)
    tb = max(align, min(tb, _round_up(B, align)))
    grid = (pl.cdiv(B, tb),)

    in_bytes = jnp.dtype(embeddings.dtype).itemsize
    evt_bytes = jnp.dtype(evt.dtype).itemsize
    out_bytes = out_dtype.itemsize

    # Deeper input buffering once tiles are large (per-step times are sub-us on
    # v7x; a third 1-2 MiB buffer hides DMA issue latency, trivial vs VMEM).
    x_spec_kwargs = {}
    in_bufs = 2
    if tb >= 2048:
        in_bufs = 3
        x_spec_kwargs["pipeline_mode"] = pl.Buffered(3)

    # Explicit scoped-VMEM limit so big-tile configs are portable to v5e's
    # 16 MiB default (and stay below v7x's 64 MiB physical VMEM).
    vmem_needed = (in_bufs * tb * E * in_bytes      # embeddings buffers
                   + 2 * tb * E * out_bytes         # output buffers
                   + 2 * E * E * evt_bytes          # evt (resident)
                   + 2 * 8 * E * 4)                 # bias (padded, resident)
    vmem_limit = int(min(64 << 20, max(16 << 20, int(vmem_needed * 1.5))))

    cost = pl.CostEstimate(
        flops=2 * B * E * E,
        transcendentals=0,
        bytes_accessed=(B * E * in_bytes + E * E * evt_bytes + E * 4
                        + B * E * out_bytes),
    )

    out = pl.pallas_call(
        _postprocess_kernel,
        out_shape=jax.ShapeDtypeStruct((B, E), out_dtype),
        grid_spec=pltpu.PrefetchScalarGridSpec(
            num_scalar_prefetch=0,
            grid=grid,
            in_specs=[
                pl.BlockSpec((tb, E), lambda i: (i, 0), **x_spec_kwargs),
                pl.BlockSpec((E, E), lambda i: (0, 0)),   # VMEM-resident
                pl.BlockSpec((1, E), lambda i: (0, 0)),   # VMEM-resident
            ],
            out_specs=pl.BlockSpec((tb, E), lambda i: (i, 0)),
        ),
        compiler_params=pltpu.CompilerParams(
            dimension_semantics=("parallel",),   # v7x: shard batch over 2 TCs
            vmem_limit_bytes=vmem_limit),
        cost_estimate=cost,
    )(embeddings, evt, bias)

    return jnp.squeeze(out)


def postprocess(embeddings, pca_eigen_vectors, pca_means, *,
                out_dtype=jnp.float32, block_rows=None):
    """JAX/Pallas equivalent of Postprocessor.forward (torch param layout)."""
    evt, bias = prepare_postprocess_params(pca_eigen_vectors, pca_means)
    return postprocess_prepared(embeddings, evt, bias,
                                out_dtype=out_dtype, block_rows=block_rows)


def _reference(embeddings, pca_eigen_vectors, pca_means):
    # Pure-JAX reference mirroring the torch code (and its op order) exactly.
    x = jnp.asarray(embeddings, jnp.float32)
    pca_applied = (pca_eigen_vectors @ (x.T - pca_means)).T
    clipped = jnp.clip(pca_applied, QUANTIZE_MIN_VAL, QUANTIZE_MAX_VAL)
    quantized = jnp.round((clipped - QUANTIZE_MIN_VAL) * _QUANT_SCALE)
    return jnp.squeeze(quantized)


def _check(out, ref, *, max_levels=1.0):
    # The folded affine / bf16 input can legally flip a value by at most one
    # quantization level at round-half boundaries.
    diff = jnp.abs(out.astype(jnp.float32) - ref)
    assert out.shape == ref.shape, (out.shape, ref.shape)
    assert float(jnp.max(diff)) <= max_levels, float(jnp.max(diff))
    of = out.astype(jnp.float32)
    assert bool(jnp.all((of >= 0.0) & (of <= 255.0)))
    assert bool(jnp.all(of == jnp.round(of)))  # integer-valued


if __name__ == "__main__":
    key = jax.random.PRNGKey(0)
    k_x, k_ev, k_mu, k_x2, k_x3, k_x4 = jax.random.split(key, 6)

    # Deterministic synthetic parameters (no checkpoint load).
    pca_eigen_vectors = jax.random.normal(
        k_ev, (EMBEDDING_SIZE, EMBEDDING_SIZE), dtype=jnp.float32) * 0.1
    pca_means = jax.random.normal(
        k_mu, (EMBEDDING_SIZE, 1), dtype=jnp.float32) * 0.05

    # Case 1: small batch, single grid step, float32 output (torch dtype).
    B1 = 8
    x1 = jax.random.normal(k_x, (B1, EMBEDDING_SIZE), dtype=jnp.float32)
    out1 = jax.block_until_ready(postprocess(x1, pca_eigen_vectors, pca_means))
    assert out1.dtype == jnp.float32
    _check(out1, _reference(x1, pca_eigen_vectors, pca_means))

    # Case 2: multi-tile grid with a ragged last block (f32, 8-aligned tiles).
    B2 = 24
    x2 = jax.random.normal(k_x2, (B2, EMBEDDING_SIZE), dtype=jnp.float32)
    out2 = jax.block_until_ready(
        postprocess(x2, pca_eigen_vectors, pca_means, block_rows=16))
    _check(out2, _reference(x2, pca_eigen_vectors, pca_means))

    # Case 3: uint8 writeback with 32-aligned tiles, multi-step grid.
    B3 = 64
    x3 = jax.random.normal(k_x3, (B3, EMBEDDING_SIZE), dtype=jnp.float32)
    out3 = jax.block_until_ready(
        postprocess(x3, pca_eigen_vectors, pca_means,
                    out_dtype=jnp.uint8, block_rows=32))
    assert out3.dtype == jnp.uint8
    _check(out3, _reference(x3, pca_eigen_vectors, pca_means))

    # Case 4: bf16 input fast path + uint8 output (reduced-HBM configuration).
    B4 = 16
    x4 = jax.random.normal(
        k_x4, (B4, EMBEDDING_SIZE), dtype=jnp.float32).astype(jnp.bfloat16)
    evt_bf16, bias = prepare_postprocess_params(
        pca_eigen_vectors, pca_means, matmul_dtype=jnp.bfloat16)
    out4 = jax.block_until_ready(
        postprocess_prepared(x4, evt_bf16, bias, out_dtype=jnp.uint8))
    assert out4.dtype == jnp.uint8
    _check(out4, _reference(x4, pca_eigen_vectors, pca_means), max_levels=1.0)

    print("KERNEL_OK")
</pallas_src>

<mosaic_0001>
module attributes {stable_mosaic.version = 11 : i64} {
  func.func @_postprocess_kernel(%arg0: i32, %arg1: memref<8x128xf32, #tpu.memory_space<vmem>>, %arg2: memref<128x128xf32, #tpu.memory_space<vmem>>, %arg3: memref<1x128xf32, #tpu.memory_space<vmem>>, %arg4: memref<8x128xf32, #tpu.memory_space<vmem>>) attributes {dimension_semantics = [#tpu.dimension_semantics<parallel>], iteration_bounds = array<i64: 1>, scalar_prefetch = 0 : i64, scratch_operands = 0 : i64, tpu.core_type = #tpu.core_type<tc>, window_params = [{transform_indices = @transform_0, window_bounds = array<i64: 8, 128>}, {pipeline_mode = #tpu.pipeline_mode<synchronous>, transform_indices = @transform_1, window_bounds = array<i64: 128, 128>}, {pipeline_mode = #tpu.pipeline_mode<synchronous>, transform_indices = @transform_2, window_bounds = array<i64: 1, 128>}, {transform_indices = @transform_3, window_bounds = array<i64: 8, 128>}]} {
    %c0 = arith.constant 0 : index
    %c0_0 = arith.constant 0 : index
    %0 = vector.load %arg1[%c0, %c0_0] : memref<8x128xf32, #tpu.memory_space<vmem>>, vector<8x128xf32>
    %c0_1 = arith.constant 0 : index
    %c0_2 = arith.constant 0 : index
    %1 = vector.load %arg2[%c0_1, %c0_2] : memref<128x128xf32, #tpu.memory_space<vmem>>, vector<128x128xf32>
    %cst = arith.constant dense<0.000000e+00> : vector<8x128xf32>
    %2 = tpu.matmul %0, %1, %cst {dimension_numbers = #tpu.dot_dimension_numbers<[1], [0], [0], [1], [0, 0, 1, 1], [], []>} : vector<8x128xf32>, vector<128x128xf32>, vector<8x128xf32> -> vector<8x128xf32>
    %c0_3 = arith.constant 0 : index
    %c0_4 = arith.constant 0 : index
    %3 = vector.load %arg3[%c0_3, %c0_4] : memref<1x128xf32, #tpu.memory_space<vmem>>, vector<1x128xf32>
    %4 = vector.broadcast %3 : vector<1x128xf32> to vector<8x128xf32>
    %5 = arith.subf %2, %4 : vector<8x128xf32>
    %cst_5 = arith.constant 0.000000e+00 : f32
    %cst_6 = arith.constant 2.550000e+02 : f32
    %6 = vector.broadcast %cst_5 : f32 to vector<8x128xf32>
    %7 = arith.maximumf %6, %5 : vector<8x128xf32>
    %8 = vector.broadcast %cst_6 : f32 to vector<8x128xf32>
    %9 = arith.minimumf %8, %7 : vector<8x128xf32>
    %10 = math.roundeven %9 : vector<8x128xf32>
    %c0_7 = arith.constant 0 : index
    %c0_8 = arith.constant 0 : index
    %11 = vector.load %arg4[%c0_7, %c0_8] : memref<8x128xf32, #tpu.memory_space<vmem>>, vector<8x128xf32>
    tpu.vector_store %arg4[%c0_7, %c0_8], %10 {strides = array<i32>} : memref<8x128xf32, #tpu.memory_space<vmem>>, vector<8x128xf32>,
    return
  }
  func.func @transform_0(%arg0: i32) -> (i32, i32) {
    %c0_i32 = arith.constant 0 : i32
    %c0_i32_0 = arith.constant 0 : i32
    return %arg0, %c0_i32 : i32, i32
  }
  func.func @transform_1(%arg0: i32) -> (i32, i32) {
    %c0_i32 = arith.constant 0 : i32
    %c0_i32_0 = arith.constant 0 : i32
    %c0_i32_1 = arith.constant 0 : i32
    return %c0_i32, %c0_i32_0 : i32, i32
  }
  func.func @transform_2(%arg0: i32) -> (i32, i32) {
    %c0_i32 = arith.constant 0 : i32
    %c0_i32_0 = arith.constant 0 : i32
    %c0_i32_1 = arith.constant 0 : i32
    return %c0_i32, %c0_i32_0 : i32, i32
  }
  func.func @transform_3(%arg0: i32) -> (i32, i32) {
    %c0_i32 = arith.constant 0 : i32
    %c0_i32_0 = arith.constant 0 : i32
    return %arg0, %c0_i32 : i32, i32
  }
}

</mosaic_0001>

<bundles_post_ra>
// kernel: tpu_custom_call.1
= control target key start
LH: loop header
LB: loop body
LE: loop exit
PB: predicated region body
PF: predicated region fallthrough
CT: control target
= control target key end

     0   :  { %8 = vsyncpa [#allocation3], 0  ;;  %s388_s0 = inlined_call_operand.hbm [shape: f32[8,128], index: 0, kind: input, shape index: {}]   ;;  %s389_s1 = inlined_call_operand.hbm [shape: f32[128,128], index: 1, kind: input, shape index: {}]   ;;  %s390_s2 = inlined_call_operand.vmem [shape: f32[1,128], index: 2, kind: input, shape index: {}]   ;;  %s391_s3 = inlined_call_operand.hbm [shape: f32[8,128], index: 3, kind: output, shape index: {}]  }
   0x1   :  { %9 = vsyncpa [#allocation6], 0 }
   0x2   :  { %10 = vsyncpa [#allocation4], 0  ;;  %s314_s12 = smov [#allocation2]   ;;  %s315_s14 = smov [#allocation5]  }
   0x3   :  { %s17_s13 = sshll.u32 %s314_s12, 4  ;;  %s26_s15 = sshll.u32 %s315_s14, 4  ;;  %s18_s13 = int_to_ptr.vmem [resolvable:$true] %s17_s13  ;;  %s342_s15 = int_to_ptr.vmem [resolvable:$true] %s26_s15 }
   0x4   :  { %s242_s18 = scalar_lea.hbm %s388_s0, 128 }
   0x5   :  { %p243_p0 = scmp.ne.s32.totalorder %s388_s0, %s242_s18  ;;  %p246_p1 = scmp.lt.u32.totalorder %s242_s18, %s388_s0 }
   0x7   :  { %p248_p2 = pnand %p246_p1, %p243_p0 }
   0x9   :  { %251 = shalt.err (!%p248_p2)
}
   0xa   :  { %s252_s23 = scalar_lea.vmem %s18_s13, 128  ;;  %p257_p4 = scmp.lt.s32.totalorder %s18_s13, %s18_s13 }
   0xb   :  { %p253_p3 = scmp.ne.s32.totalorder %s18_s13, %s252_s23  ;;  %p258_p5 = scmp.lt.s32.totalorder %s252_s23, %s252_s23 }
   0xd   :  { %p259_p6 = por %p258_p5, %p257_p4 }
   0xf   :  { %p260_p7 = pnand %p259_p6, %p253_p3 }
  0x11   :  { %263 = shalt.err (!%p260_p7)
}
  0x12   :  { %20 = dma.hbm_to_vmem [thread:$0]  %s388_s0, 128, %s18_s13, [#allocation3]  }
  0x13   :  { %s264_s28 = scalar_lea.hbm %s389_s1, 2048 }
  0x14   :  { %p265_p8 = scmp.ne.s32.totalorder %s389_s1, %s264_s28  ;;  %p268_p9 = scmp.lt.u32.totalorder %s264_s28, %s389_s1 }
  0x16   :  { %p270_p10 = pnand %p268_p9, %p265_p8 }
  0x18   :  { %273 = shalt.err (!%p270_p10)
}
  0x19   :  { %s274_s6 = scalar_lea.vmem %s342_s15, 2048  ;;  %p279_p12 = scmp.lt.s32.totalorder %s342_s15, %s342_s15 }
  0x1a   :  { %p275_p11 = scmp.ne.s32.totalorder %s342_s15, %s274_s6  ;;  %p280_p13 = scmp.lt.s32.totalorder %s274_s6, %s274_s6 }
  0x1c   :  { %p281_p0 = por %p280_p13, %p279_p12 }
  0x1e   :  { %p282_p1 = pnand %p281_p0, %p275_p11 }
  0x20   :  { %285 = shalt.err (!%p282_p1)
}
  0x21   :  { %s316_s0 = smov 128   ;;  %s317_s7 = smov 8  }
  0x22   :  { %32 = dma.hbm_to_vmem [thread:$0]  %s389_s1, 2048, %s342_s15, [#allocation6], %s316_s0, %s316_s0, %s317_s7  }
  0x23   :  { %308 = dma.done.wait [#allocation3], 128  }
  0x24   :  { %309 = vsyncadd [#allocation3], 4294967168 }
  0x25   :  { %310 = dma.done.wait [#allocation6], 2048  }
  0x26   :  { %311 = vsyncadd [#allocation6], 4294965248  ;;  %v318_v0 = vmov 0.0|0.0   ;;  %vm319_vm0 = vmmov 0   ;;  %v320_v1 = vmov 0.0   ;;  %v42_v2 = vld [vmem:[#allocation5] sm:$0xff] }
  0x27   :  { %209 = vmatprep.subr.bf16.mxu0 %v318_v0  ;;  %206 = vmatprep.mubr.msk.f32.mxu0 %vm319_vm0, %v320_v1  ;;  %v43_v3 = vld [vmem:[#allocation5 + $0x8] sm:$0xff]  ;;  %v44_v4 = vld [vmem:[#allocation5 + $0x10] sm:$0xff]  ;;  %v45_v6 = vld [vmem:[#allocation5 + $0x18] sm:$0xff]  ;;  %s321_s11 = smov [#allocation7]  }
  0x28   :  { %v210_v5 = vpack.c.bf16 %v43_v3, %v42_v2  ;;  %v213_v7 = vpack.c.bf16 %v45_v6, %v44_v4  ;;  %v46_v8 = vld [vmem:[#allocation5 + $0x20] sm:$0xff]  ;;  %v47_v9 = vld [vmem:[#allocation5 + $0x28] sm:$0xff]  ;;  %v48_v11 = vld [vmem:[#allocation5 + $0x30] sm:$0xff]  ;;  %s146_s12 = sshll.u32 %s321_s11, 4  ;;  %s147_s12 = int_to_ptr.vmem [resolvable:$true] %s146_s12 }
  0x29   :  { %v216_v10 = vpack.c.bf16 %v47_v9, %v46_v8  ;;  %v49_v12 = vld [vmem:[#allocation5 + $0x38] sm:$0xff]  ;;  %v50_v14 = vld [vmem:[#allocation5 + $0x40] sm:$0xff]  ;;  %v51_v15 = vld [vmem:[#allocation5 + $0x48] sm:$0xff]  ;;  %s286_s13 = scalar_lea.vmem %s147_s12, 128  ;;  %p291_p3 = scmp.lt.s32.totalorder %s147_s12, %s147_s12 }
  0x2a   :  { %211 = vmatpush3.bf16.msra.mxu0 %v210_v5  ;;  %v219_v13 = vpack.c.bf16 %v49_v12, %v48_v11  ;;  %v222_v16 = vpack.c.bf16 %v51_v15, %v50_v14  ;;  %v52_v17 = vld [vmem:[#allocation5 + $0x50] sm:$0xff]  ;;  %v53_v18 = vld [vmem:[#allocation5 + $0x58] sm:$0xff]  ;;  %v54_v20 = vld [vmem:[#allocation5 + $0x60] sm:$0xff]  ;;  %p287_p2 = scmp.ne.s32.totalorder %s147_s12, %s286_s13  ;;  %p292_p4 = scmp.lt.s32.totalorder %s286_s13, %s286_s13 }
  0x2b   :  { %212 = vmatprep.subr.bf16.mxu0 %v318_v0  ;;  %v225_v19 = vpack.c.bf16 %v53_v18, %v52_v17  ;;  %v55_v21 = vld [vmem:[#allocation5 + $0x68] sm:$0xff]  ;;  %v56_v23 = vld [vmem:[#allocation5 + $0x70] sm:$0xff]  ;;  %v57_v24 = vld [vmem:[#allocation5 + $0x78] sm:$0xff] }
  0x2c   :  { %v228_v22 = vpack.c.bf16 %v55_v21, %v54_v20  ;;  %v231_v25 = vpack.c.bf16 %v57_v24, %v56_v23  ;;  %v41_v26 = vld [vmem:[#allocation2] sm:$0xff]  ;;  %p293_p5 = por %p292_p4, %p291_p3 }
  0x2d   :  { %v156_v27 = vld [vmem:[%s390_s2] ss:$0 sm:$0xff] }
  0x2e   :  { %214 = vmatpush3.bf16.msra.mxu0 %v213_v7  ;;  %p294_p6 = pnand %p293_p5, %p287_p2 }
  0x2f   :  { %215 = vmatprep.subr.bf16.mxu0 %v318_v0 }
  0x32   :  { %217 = vmatpush3.bf16.msra.mxu0 %v216_v10 }
  0x33   :  { %218 = vmatprep.subr.bf16.mxu0 %v318_v0 }
  0x36   :  { %220 = vmatpush3.bf16.msra.mxu0 %v219_v13 }
  0x37   :  { %221 = vmatprep.subr.bf16.mxu0 %v318_v0 }
  0x3a   :  { %223 = vmatpush3.bf16.msra.mxu0 %v222_v16 }
  0x3b   :  { %224 = vmatprep.subr.bf16.mxu0 %v318_v0 }
  0x3e   :  { %226 = vmatpush3.bf16.msra.mxu0 %v225_v19 }
  0x3f   :  { %227 = vmatprep.subr.bf16.mxu0 %v318_v0 }
  0x42   :  { %229 = vmatpush3.bf16.msra.mxu0 %v228_v22 }
  0x43   :  { %230 = vmatprep.subr.bf16.mxu0 %v318_v0 }
  0x46   :  { %232 = vmatpush3.bf16.msra.mxu0 %v231_v25 }
  0x49   :  { %207 = vmatmul.mubr.f32.vlgmr.msra.gmra.mrb[0].mxu0 %v41_v26 }
 0x11c   :  { %v124_v28 = vpop.f32.mrb[0].mxu0 }
 0x11d   :  { %v135_v29 = vsub.f32 %v124_v28, %v156_v27  ;;  %v208_v30 = vpop.f32.mrb[1].mxu0 }
 0x11f   :  { %v136_v31 = vmax.f32 %v135_v29, 0.0 }
 0x121   :  { %v137_v32 = vmin.f32 %v136_v31, 255.0 }
 0x123   :  { %v233_v33 = vround.rtne.f32 %v137_v32 }
 0x125   :  { %139 = vst [vmem:[#allocation7] sm:$0xff] %v233_v33 }
 0x126   :  { %297 = shalt.err (!%p294_p6)
}
 0x127   :  { %s298_s2 = scalar_lea.hbm %s391_s3, 128 }
 0x128   :  { %p299_p7 = scmp.ne.s32.totalorder %s391_s3, %s298_s2  ;;  %p302_p8 = scmp.lt.u32.totalorder %s298_s2, %s391_s3 }
 0x12a   :  { %p304_p9 = pnand %p302_p8, %p299_p7 }
 0x12c   :  { %307 = shalt.err (!%p304_p9)
}
 0x12d   :  { %149 = dma.vmem_to_hbm [thread:$0]  %s147_s12, 128, %s391_s3, [#allocation4]  }
 0x12e   :  { %312 = dma.done.wait [#allocation4], 128  }
 0x12f   :  { %313 = vsyncadd [#allocation4], 4294967168 }
 0x130   :  { %153 = vsyncpa [#allocation3], 1 }
 0x131   :  { %154 = vsyncpa [#allocation6], 1 }
 0x132   :  { %155 = vsyncpa [#allocation4], 1 }

</bundles_post_ra>
